<compile_context>
chip_gen: v7x
topology: tpu7x:2x2x1
jax: 0.10.0
libtpu: 0.0.40
codegen_flags: <defaults>
</compile_context>

<pallas_src>
import functools

import jax
import jax.numpy as jnp
from jax.experimental import pallas as pl
from jax.experimental.pallas import tpu as pltpu

EPS = 1e-5


def _wlr_kernel(x_ref, gamma_ref, beta_ref, w_ref, b_ref, o_ref,
                sum_ref, sumsq_ref, *, inv_n):
    # Layout: batch is the minor (lane) axis everywhere.
    #   x_ref:     (n_in, Bt)  one batch tile of the transposed input
    #   gamma_ref: (F, 1)      BatchNorm1d weight, F = n_in + 1
    #   beta_ref:  (F, 1)      BatchNorm1d bias
    #   w_ref:     (F, 1)      Linear weight (out_features = 1)
    #   b_ref:     (1, 1)      Linear bias
    #   o_ref:     (1, Bt)     sigmoid output tile (lane dense)
    #   sum_ref / sumsq_ref: (F, 1) VMEM accumulators, persist across the grid
    p = pl.program_id(0)          # phase: 0 = batch stats, 1 = normalize+logit
    t = pl.program_id(1)          # batch tile index

    x = x_ref[...].astype(jnp.float32)                       # (n_in, Bt)
    n_in = x.shape[0]
    # The appended feature: diff = data[:, -2] - data[:, -1]
    diff = x[n_in - 2:n_in - 1, :] - x[n_in - 1:n_in, :]     # (1, Bt)

    @pl.when(p == 0)
    def _stats():
        @pl.when(t == 0)
        def _init():
            sum_ref[...] = jnp.zeros_like(sum_ref)
            sumsq_ref[...] = jnp.zeros_like(sumsq_ref)

        # Per-tile partial sums over the lane (batch) axis -> (F, 1)
        s = jnp.concatenate(
            [jnp.sum(x, axis=-1, keepdims=True),
             jnp.sum(diff, axis=-1, keepdims=True)], axis=0)
        sq = jnp.concatenate(
            [jnp.sum(x * x, axis=-1, keepdims=True),
             jnp.sum(diff * diff, axis=-1, keepdims=True)], axis=0)
        sum_ref[...] += s
        sumsq_ref[...] += sq

    @pl.when(p == 1)
    def _apply():
        # Fold BatchNorm (training-mode batch stats) + Linear into a single
        # per-feature scale and a scalar offset.  All (F, 1) work, independent
        # of the batch tile size.
        mean = sum_ref[...] * inv_n                           # (F, 1)
        var = sumsq_ref[...] * inv_n - mean * mean            # biased variance
        rstd = jax.lax.rsqrt(var + EPS)
        scale = gamma_ref[...] * rstd * w_ref[...]            # (F, 1)
        const = b_ref[...] + jnp.sum(
            w_ref[...] * beta_ref[...] - scale * mean, axis=0, keepdims=True)

        # Hot path: one fused scale/reduce over the (n_in, Bt) tile, VPU + XLU
        # only (K=n_in+1, N=1 would waste the MXU).
        logits = (jnp.sum(scale[:n_in, :] * x, axis=0, keepdims=True)
                  + scale[n_in:n_in + 1, :] * diff + const)   # (1, Bt)
        o_ref[...] = jax.nn.sigmoid(logits).astype(o_ref.dtype)


def _pick_batch_tile(batch, max_tile):
    # Largest lane-multiple tile (<= max_tile) that evenly divides the batch.
    # TODO(synk): ragged batches (not a multiple of 128) fall back to a single
    # whole-array block instead of being padded; pad upstream for huge ragged B.
    if batch % 128 != 0:
        return batch
    bt = max(128, min(max_tile - max_tile % 128, batch))
    while batch % bt != 0:
        bt -= 128
    return bt


def weighted_logistic_regression(data, sample_weight, gamma, beta, w, b,
                                 *, block_b=2048):
    """Forward pass of WeightedLogisticRegression.

    data: (B, n_inputs) float32.  sample_weight is accepted but unused
    (matches the PyTorch forward).  gamma/beta/w have n_inputs+1 elements,
    b has 1 element.
    """
    del sample_weight  # ignored by the reference forward pass
    batch, n_in = data.shape
    feat = n_in + 1

    # One transpose outside the kernel puts batch on the TPU lane axis.
    xt = data.T.astype(jnp.float32)                     # (n_in, B)
    gamma_c = jnp.asarray(gamma, jnp.float32).reshape(feat, 1)
    beta_c = jnp.asarray(beta, jnp.float32).reshape(feat, 1)
    w_c = jnp.asarray(w, jnp.float32).reshape(feat, 1)
    b_c = jnp.asarray(b, jnp.float32).reshape(1, 1)

    bt = _pick_batch_tile(batch, block_b)
    n_tiles = batch // bt
    kernel = functools.partial(_wlr_kernel, inv_n=1.0 / batch)

    out = pl.pallas_call(
        kernel,
        out_shape=jax.ShapeDtypeStruct((1, batch), jnp.float32),
        grid_spec=pltpu.PrefetchScalarGridSpec(
            num_scalar_prefetch=0,
            grid=(2, n_tiles),              # (phase, batch tile)
            in_specs=[
                pl.BlockSpec((n_in, bt), lambda p, t: (0, t)),
                pl.BlockSpec((feat, 1), lambda p, t: (0, 0)),
                pl.BlockSpec((feat, 1), lambda p, t: (0, 0)),
                pl.BlockSpec((feat, 1), lambda p, t: (0, 0)),
                pl.BlockSpec((1, 1), lambda p, t: (0, 0)),
            ],
            # During the stats phase the output block index is pinned to 0, so
            # no un-written tile is ever flushed to HBM; phase 1 visits each
            # tile exactly once and writes lane-dense (1, Bt) blocks.
            out_specs=pl.BlockSpec((1, bt), lambda p, t: (0, t * p)),
            scratch_shapes=[
                pltpu.VMEM((feat, 1), jnp.float32),   # running sum(x_f)
                pltpu.VMEM((feat, 1), jnp.float32),   # running sum(x_f^2)
            ],
        ),
        compiler_params=pltpu.CompilerParams(
            # The batch-tile axis carries the stats accumulation -> arbitrary.
            dimension_semantics=("arbitrary", "arbitrary")),
    )(xt, gamma_c, beta_c, w_c, b_c)

    return out.reshape(batch, 1)


if __name__ == "__main__":
    n_inputs = 3
    F = n_inputs + 1
    B = 256  # small, but exercises the 2-phase grid with two 128-lane tiles

    key = jax.random.PRNGKey(0)
    k_data, k_w, k_b, k_sw = jax.random.split(key, 4)

    data = jax.random.normal(k_data, (B, n_inputs), dtype=jnp.float32)
    sample_weight = jax.random.uniform(k_sw, (B,), dtype=jnp.float32)

    # Deterministic parameter init (shapes from the module's __init__):
    # BatchNorm1d(F): weight=1, bias=0 (PyTorch defaults)
    gamma = jnp.ones((F,), dtype=jnp.float32)
    beta = jnp.zeros((F,), dtype=jnp.float32)
    # Linear(F, 1): PyTorch default uniform(-1/sqrt(F), 1/sqrt(F))
    bound = 1.0 / jnp.sqrt(jnp.float32(F))
    w = jax.random.uniform(k_w, (1, F), minval=-bound, maxval=bound,
                           dtype=jnp.float32)
    b = jax.random.uniform(k_b, (1,), minval=-bound, maxval=bound,
                           dtype=jnp.float32)

    out = weighted_logistic_regression(data, sample_weight, gamma, beta, w, b,
                                       block_b=128)
    out = jax.block_until_ready(out)

    # Pure-JAX reference (same math as the PyTorch forward in training mode)
    diff = data[:, -2:-1] - data[:, -1:]
    xa = jnp.concatenate([data, diff], axis=-1)
    mean = jnp.mean(xa, axis=0, keepdims=True)
    var = jnp.mean((xa - mean) ** 2, axis=0, keepdims=True)
    xn = (xa - mean) / jnp.sqrt(var + EPS) * gamma.reshape(1, F) \
        + beta.reshape(1, F)
    ref = jax.nn.sigmoid(xn @ w.reshape(1, F).T + b.reshape(1, 1))

    assert out.shape == (B, 1)
    assert jnp.allclose(out, ref, atol=1e-5, rtol=1e-5), (out, ref)

    print("KERNEL_OK")
</pallas_src>

<mosaic_0001>
module attributes {stable_mosaic.version = 11 : i64} {
  func.func @_wlr_kernel(%arg0: i32, %arg1: i32, %arg2: memref<3x128xf32, #tpu.memory_space<vmem>>, %arg3: memref<4x1xf32, #tpu.memory_space<vmem>>, %arg4: memref<4x1xf32, #tpu.memory_space<vmem>>, %arg5: memref<4x1xf32, #tpu.memory_space<vmem>>, %arg6: memref<1x1xf32, #tpu.memory_space<vmem>>, %arg7: memref<1x128xf32, #tpu.memory_space<vmem>>, %arg8: memref<4x1xf32, #tpu.memory_space<vmem>>, %arg9: memref<4x1xf32, #tpu.memory_space<vmem>>) attributes {dimension_semantics = [#tpu.dimension_semantics<arbitrary>, #tpu.dimension_semantics<arbitrary>], iteration_bounds = array<i64: 2, 2>, scalar_prefetch = 0 : i64, scratch_operands = 2 : i64, tpu.core_type = #tpu.core_type<tc>, window_params = [{transform_indices = @transform_0, window_bounds = array<i64: 3, 128>}, {pipeline_mode = #tpu.pipeline_mode<synchronous>, transform_indices = @transform_1, window_bounds = array<i64: 4, 1>}, {pipeline_mode = #tpu.pipeline_mode<synchronous>, transform_indices = @transform_2, window_bounds = array<i64: 4, 1>}, {pipeline_mode = #tpu.pipeline_mode<synchronous>, transform_indices = @transform_3, window_bounds = array<i64: 4, 1>}, {pipeline_mode = #tpu.pipeline_mode<synchronous>, transform_indices = @transform_4, window_bounds = array<i64: 1, 1>}, {transform_indices = @transform_5, window_bounds = array<i64: 1, 128>}]} {
    %c0 = arith.constant 0 : index
    %c0_0 = arith.constant 0 : index
    %0 = vector.load %arg2[%c0, %c0_0] : memref<3x128xf32, #tpu.memory_space<vmem>>, vector<3x128xf32>
    %1 = vector.extract_strided_slice %0 {offsets = [1, 0], sizes = [1, 128], strides = [1, 1]} : vector<3x128xf32> to vector<1x128xf32>
    %2 = vector.extract_strided_slice %0 {offsets = [2, 0], sizes = [1, 128], strides = [1, 1]} : vector<3x128xf32> to vector<1x128xf32>
    %3 = arith.subf %1, %2 : vector<1x128xf32>
    %c0_i32 = arith.constant 0 : i32
    %4 = arith.cmpi eq, %arg0, %c0_i32 : i32
    %5 = arith.extui %4 : i1 to i32
    %c0_i32_1 = arith.constant 0 : i32
    %6 = arith.cmpi ne, %5, %c0_i32_1 : i32
    scf.if %6 {
      %c0_i32_3 = arith.constant 0 : i32
      %10 = arith.cmpi eq, %arg1, %c0_i32_3 : i32
      %11 = arith.extui %10 : i1 to i32
      %c0_i32_4 = arith.constant 0 : i32
      %12 = arith.cmpi ne, %11, %c0_i32_4 : i32
      scf.if %12 {
        %cst_16 = arith.constant 0.000000e+00 : f32
        %31 = vector.broadcast %cst_16 : f32 to vector<4x1xf32>
        %c0_17 = arith.constant 0 : index
        %c0_18 = arith.constant 0 : index
        %32 = vector.load %arg8[%c0_17, %c0_18] : memref<4x1xf32, #tpu.memory_space<vmem>>, vector<4x1xf32>
        tpu.vector_store %arg8[%c0_17, %c0_18], %31 {strides = array<i32>} : memref<4x1xf32, #tpu.memory_space<vmem>>, vector<4x1xf32>,
        %cst_19 = arith.constant 0.000000e+00 : f32
        %33 = vector.broadcast %cst_19 : f32 to vector<4x1xf32>
        %c0_20 = arith.constant 0 : index
        %c0_21 = arith.constant 0 : index
        %34 = vector.load %arg9[%c0_20, %c0_21] : memref<4x1xf32, #tpu.memory_space<vmem>>, vector<4x1xf32>
        tpu.vector_store %arg9[%c0_20, %c0_21], %33 {strides = array<i32>} : memref<4x1xf32, #tpu.memory_space<vmem>>, vector<4x1xf32>,
      } else {
      }
      %cst = arith.constant dense<0.000000e+00> : vector<3xf32>
      %13 = vector.multi_reduction <add>, %0, %cst [1] : vector<3x128xf32> to vector<3xf32>
      %14 = vector.shape_cast %13 : vector<3xf32> to vector<3x1xf32>
      %cst_5 = arith.constant dense<0.000000e+00> : vector<1xf32>
      %15 = vector.multi_reduction <add>, %3, %cst_5 [1] : vector<1x128xf32> to vector<1xf32>
      %16 = vector.shape_cast %15 : vector<1xf32> to vector<1x1xf32>
      %17 = tpu.concatenate %14, %16 in 0 : vector<3x1xf32>, vector<1x1xf32> -> vector<4x1xf32>
      %18 = arith.mulf %0, %0 : vector<3x128xf32>
      %cst_6 = arith.constant dense<0.000000e+00> : vector<3xf32>
      %19 = vector.multi_reduction <add>, %18, %cst_6 [1] : vector<3x128xf32> to vector<3xf32>
      %20 = vector.shape_cast %19 : vector<3xf32> to vector<3x1xf32>
      %21 = arith.mulf %3, %3 : vector<1x128xf32>
      %cst_7 = arith.constant dense<0.000000e+00> : vector<1xf32>
      %22 = vector.multi_reduction <add>, %21, %cst_7 [1] : vector<1x128xf32> to vector<1xf32>
      %23 = vector.shape_cast %22 : vector<1xf32> to vector<1x1xf32>
      %24 = tpu.concatenate %20, %23 in 0 : vector<3x1xf32>, vector<1x1xf32> -> vector<4x1xf32>
      %c0_8 = arith.constant 0 : index
      %c0_9 = arith.constant 0 : index
      %25 = vector.load %arg8[%c0_8, %c0_9] : memref<4x1xf32, #tpu.memory_space<vmem>>, vector<4x1xf32>
      %26 = arith.addf %25, %17 : vector<4x1xf32>
      %c0_10 = arith.constant 0 : index
      %c0_11 = arith.constant 0 : index
      %27 = vector.load %arg8[%c0_10, %c0_11] : memref<4x1xf32, #tpu.memory_space<vmem>>, vector<4x1xf32>
      tpu.vector_store %arg8[%c0_10, %c0_11], %26 {strides = array<i32>} : memref<4x1xf32, #tpu.memory_space<vmem>>, vector<4x1xf32>,
      %c0_12 = arith.constant 0 : index
      %c0_13 = arith.constant 0 : index
      %28 = vector.load %arg9[%c0_12, %c0_13] : memref<4x1xf32, #tpu.memory_space<vmem>>, vector<4x1xf32>
      %29 = arith.addf %28, %24 : vector<4x1xf32>
      %c0_14 = arith.constant 0 : index
      %c0_15 = arith.constant 0 : index
      %30 = vector.load %arg9[%c0_14, %c0_15] : memref<4x1xf32, #tpu.memory_space<vmem>>, vector<4x1xf32>
      tpu.vector_store %arg9[%c0_14, %c0_15], %29 {strides = array<i32>} : memref<4x1xf32, #tpu.memory_space<vmem>>, vector<4x1xf32>,
    } else {
    }
    %c1_i32 = arith.constant 1 : i32
    %7 = arith.cmpi eq, %arg0, %c1_i32 : i32
    %8 = arith.extui %7 : i1 to i32
    %c0_i32_2 = arith.constant 0 : i32
    %9 = arith.cmpi ne, %8, %c0_i32_2 : i32
    scf.if %9 {
      %c0_3 = arith.constant 0 : index
      %c0_4 = arith.constant 0 : index
      %10 = vector.load %arg8[%c0_3, %c0_4] : memref<4x1xf32, #tpu.memory_space<vmem>>, vector<4x1xf32>
      %cst = arith.constant 3.906250e-03 : f32
      %11 = vector.broadcast %cst : f32 to vector<4x1xf32>
      %12 = arith.mulf %10, %11 : vector<4x1xf32>
      %c0_5 = arith.constant 0 : index
      %c0_6 = arith.constant 0 : index
      %13 = vector.load %arg9[%c0_5, %c0_6] : memref<4x1xf32, #tpu.memory_space<vmem>>, vector<4x1xf32>
      %cst_7 = arith.constant 3.906250e-03 : f32
      %14 = vector.broadcast %cst_7 : f32 to vector<4x1xf32>
      %15 = arith.mulf %13, %14 : vector<4x1xf32>
      %16 = arith.mulf %12, %12 : vector<4x1xf32>
      %17 = arith.subf %15, %16 : vector<4x1xf32>
      %cst_8 = arith.constant 9.99999974E-6 : f32
      %18 = vector.broadcast %cst_8 : f32 to vector<4x1xf32>
      %19 = arith.addf %17, %18 : vector<4x1xf32>
      %20 = math.rsqrt %19 : vector<4x1xf32>
      %c0_9 = arith.constant 0 : index
      %c0_10 = arith.constant 0 : index
      %21 = vector.load %arg3[%c0_9, %c0_10] : memref<4x1xf32, #tpu.memory_space<vmem>>, vector<4x1xf32>
      %22 = arith.mulf %21, %20 : vector<4x1xf32>
      %c0_11 = arith.constant 0 : index
      %c0_12 = arith.constant 0 : index
      %23 = vector.load %arg5[%c0_11, %c0_12] : memref<4x1xf32, #tpu.memory_space<vmem>>, vector<4x1xf32>
      %24 = arith.mulf %22, %23 : vector<4x1xf32>
      %c0_13 = arith.constant 0 : index
      %c0_14 = arith.constant 0 : index
      %25 = vector.load %arg6[%c0_13, %c0_14] : memref<1x1xf32, #tpu.memory_space<vmem>>, vector<1x1xf32>
      %c0_15 = arith.constant 0 : index
      %c0_16 = arith.constant 0 : index
      %26 = vector.load %arg5[%c0_15, %c0_16] : memref<4x1xf32, #tpu.memory_space<vmem>>, vector<4x1xf32>
      %c0_17 = arith.constant 0 : index
      %c0_18 = arith.constant 0 : index
      %27 = vector.load %arg4[%c0_17, %c0_18] : memref<4x1xf32, #tpu.memory_space<vmem>>, vector<4x1xf32>
      %28 = arith.mulf %26, %27 : vector<4x1xf32>
      %29 = arith.mulf %24, %12 : vector<4x1xf32>
      %30 = arith.subf %28, %29 : vector<4x1xf32>
      %cst_19 = arith.constant dense<0.000000e+00> : vector<1xf32>
      %31 = vector.multi_reduction <add>, %30, %cst_19 [0] : vector<4x1xf32> to vector<1xf32>
      %32 = vector.shape_cast %31 : vector<1xf32> to vector<1x1xf32>
      %33 = arith.addf %25, %32 : vector<1x1xf32>
      %34 = vector.extract_strided_slice %24 {offsets = [0, 0], sizes = [3, 1], strides = [1, 1]} : vector<4x1xf32> to vector<3x1xf32>
      %35 = vector.broadcast %34 : vector<3x1xf32> to vector<3x128xf32>
      %36 = arith.mulf %35, %0 : vector<3x128xf32>
      %cst_20 = arith.constant dense<0.000000e+00> : vector<128xf32>
      %37 = vector.multi_reduction <add>, %36, %cst_20 [0] : vector<3x128xf32> to vector<128xf32>
      %38 = vector.shape_cast %37 : vector<128xf32> to vector<1x128xf32>
      %39 = vector.extract_strided_slice %24 {offsets = [3, 0], sizes = [1, 1], strides = [1, 1]} : vector<4x1xf32> to vector<1x1xf32>
      %40 = vector.broadcast %39 : vector<1x1xf32> to vector<1x128xf32>
      %41 = arith.mulf %40, %3 : vector<1x128xf32>
      %42 = arith.addf %38, %41 : vector<1x128xf32>
      %43 = vector.broadcast %33 : vector<1x1xf32> to vector<1x128xf32>
      %44 = arith.addf %42, %43 : vector<1x128xf32>
      %45 = arith.negf %44 : vector<1x128xf32>
      %46 = math.exp %45 : vector<1x128xf32>
      %cst_21 = arith.constant 1.000000e+00 : f32
      %47 = vector.broadcast %cst_21 : f32 to vector<1x128xf32>
      %48 = arith.addf %47, %46 : vector<1x128xf32>
      %49 = arith.divf %47, %48 : vector<1x128xf32>
      %c0_22 = arith.constant 0 : index
      %c0_23 = arith.constant 0 : index
      %50 = vector.load %arg7[%c0_22, %c0_23] : memref<1x128xf32, #tpu.memory_space<vmem>>, vector<1x128xf32>
      tpu.vector_store %arg7[%c0_22, %c0_23], %49 {strides = array<i32>} : memref<1x128xf32, #tpu.memory_space<vmem>>, vector<1x128xf32>,
    } else {
    }
    return
  }
  func.func @transform_0(%arg0: i32, %arg1: i32) -> (i32, i32) {
    %c0_i32 = arith.constant 0 : i32
    %c0_i32_0 = arith.constant 0 : i32
    return %c0_i32, %arg1 : i32, i32
  }
  func.func @transform_1(%arg0: i32, %arg1: i32) -> (i32, i32) {
    %c0_i32 = arith.constant 0 : i32
    %c0_i32_0 = arith.constant 0 : i32
    %c0_i32_1 = arith.constant 0 : i32
    return %c0_i32, %c0_i32_0 : i32, i32
  }
  func.func @transform_2(%arg0: i32, %arg1: i32) -> (i32, i32) {
    %c0_i32 = arith.constant 0 : i32
    %c0_i32_0 = arith.constant 0 : i32
    %c0_i32_1 = arith.constant 0 : i32
    return %c0_i32, %c0_i32_0 : i32, i32
  }
  func.func @transform_3(%arg0: i32, %arg1: i32) -> (i32, i32) {
    %c0_i32 = arith.constant 0 : i32
    %c0_i32_0 = arith.constant 0 : i32
    %c0_i32_1 = arith.constant 0 : i32
    return %c0_i32, %c0_i32_0 : i32, i32
  }
  func.func @transform_4(%arg0: i32, %arg1: i32) -> (i32, i32) {
    %c0_i32 = arith.constant 0 : i32
    %c0_i32_0 = arith.constant 0 : i32
    %c0_i32_1 = arith.constant 0 : i32
    return %c0_i32, %c0_i32_0 : i32, i32
  }
  func.func @transform_5(%arg0: i32, %arg1: i32) -> (i32, i32) {
    %0 = arith.muli %arg1, %arg0 : i32
    %c0_i32 = arith.constant 0 : i32
    %c0_i32_0 = arith.constant 0 : i32
    return %c0_i32, %0 : i32, i32
  }
}

</mosaic_0001>

<bundles_post_ra>
// kernel: tpu_custom_call.1
= control target key start
LH: loop header
LB: loop body
LE: loop exit
PB: predicated region body
PF: predicated region fallthrough
CT: control target
= control target key end

     0   :  { %s820_s0 = inlined_call_operand.vmem [shape: f32[3,256], index: 0, kind: input, shape index: {}]   ;;  %s821_s1 = inlined_call_operand.vmem [shape: f32[4,1], index: 1, kind: input, shape index: {}]   ;;  %s822_s2 = inlined_call_operand.vmem [shape: f32[4,1], index: 2, kind: input, shape index: {}]   ;;  %s823_s3 = inlined_call_operand.vmem [shape: f32[4,1], index: 3, kind: input, shape index: {}]   ;;  %s824_s4 = inlined_call_operand.<no memory space> [shape: f32[1,1], index: 4, kind: input, shape index: {}]   ;;  %s825_s5 = inlined_call_operand.hbm [shape: f32[1,256], index: 5, kind: output, shape index: {}]  }
   0x1   :  { %v10_v0 = vstv %s824_s4 }
   0x2   :  { %11 = vst [vmem:[#allocation4] sm:$0x1] %v10_v0 }
   0x3   :  { %12 = vsyncpa [#allocation6], 0 }
   0x4   :  { %14 = vsyncpa [#allocation6 + $0x1], 0  ;;  %s654_s20 = smov 0   ;;  %s656_s21 = smov 0  }
   0x5   :  { %s658_s22 = smov 0   ;;  %s660_s23 = smov 0  }
   0x6   :  { %s662_s24 = smov 0   ;;  %s664_s25 = smov 0  }
   0x7   :  { %s666_s26 = smov 0   ;;  %s668_s27 = smov 0  }
   0x8 LB: > { %s429_s4 = sadd.s32 4294967295, %s616_s27   ;;  %s430_s28 = sadd.s32 4294967294, %s616_s27   ;;  %s616_s27 = sphi %s668_s27, %s20_s27   ;;  %s612_s26 = sphi %s666_s26, %s834_s26   ;;  %s608_s25 = sphi %s664_s25, %s833_s25   ;;  %s604_s24 = sphi %s662_s24, %s832_s24   ;;  %s600_s23 = sphi %s660_s23, %s831_s23   ;;  %s596_s22 = sphi %s658_s22, %s830_s22   ;;  %s592_s21 = sphi %s656_s21, %s829_s21   ;;  %s588_s20 = sphi %s654_s20, %s828_s20  }
   0x9   : > { %s29_s29 = sadd.s32 1, %s608_s25  ;;  %s32_s30 = sadd.s32 1, %s612_s26 }
   0xa   : > { %p30_p0 = scmp.ge.s32.totalorder %s29_s29, 2  ;;  %s146_s6 = smul.u32 %s608_s25, %s612_s26 }
   0xb   : > { %p161_p1 = scmp.ne.s32.totalorder %s596_s22, %s592_s21  ;;  %p162_p2 = scmp.eq.s32.totalorder %s429_s4, 3 }
   0xc   : > { %s836_s29 = smov (%p30_p0, %s29_s29), 0  ;;  %s838_s30 = smov (!%p30_p0, %s32_s30), %s612_s26 }
   0xd   : > { %p167_p3 = scmp.ne.s32.totalorder %s592_s21, %s588_s20  ;;  %p34_p4 = scmp.ge.s32.totalorder %s838_s30, 2 }
   0xe   : > { %p168_p5 = scmp.eq.s32.totalorder %s430_s28, 3  ;;  %p707_p6 = por %p162_p2, %p161_p1 }
   0xf   : > { %p433_p7 = scmp.ge.s32.totalorder %s616_s27, 1  ;;  %s840_s30 = smov (%p34_p4, %s838_s30), 0 }
  0x10   : > { %p714_p8 = por %p168_p5, %p167_p3  ;;  %p205_p9 = scmp.lt.s32.totalorder %s616_s27, 5 }
  0x11   : > { %s147_s9 = smul.u32 %s840_s30, %s836_s29  ;;  %s151_s11 = sadd.s32 1, %s596_s22 }
  0x12   : > { %p206_p10 = pnand %p433_p7, %p205_p9 }
  0x13   : > { %s148_s10 = ssub.s32 %s146_s6, %s147_s9  ;;  %s229_s13 = sand.u32 (!%p206_p10), 1, %s592_s21  }
  0x14   : > { %p149_p11 = scmp.eq.s32.totalorder %s148_s10, 0  ;;  %209 = sbr.rel (%p206_p10) target bundleno = 427 (0x1ab), region = 40 }
  0x15   : > { %p231_p12 = scmp.lt.s32.totalorder (!%p206_p10), %s600_s23, 1  ;;  %s739_s19 = scalar_lea.vmem (!%p206_p10), [#allocation5], %s229_s13 }
  0x16   : > { %s723_s12 = scalar_select %p149_p11, %s596_s22, %s151_s11  }
  0x17   : > { %p435_p13 = scmp.ne.s32.totalorder (!%p206_p10), %s604_s24, 0 }
  0x1b   : > { %s232_s14 = scalar_select %p231_p12, %s600_s23, 1 }
  0x1c   : > { %244 = sbr.rel (%p435_p13) target bundleno = 196 (0xc4), region = 44  ;;  %p436_p0 = scmp.ne.s32.totalorder (!%p435_p13), %s600_s23, 0 }
  0x1d   : > { %s434_s15 = sshll.u32 %s232_s14, 2 }
  0x1e   : > { %s234_s18 = scalar_lea.vmem %s820_s0, %s434_s15 }
  0x1f   : > { %v731_v1 = vld [vmem:[%s234_s18] sm:$0x7] }
  0x20   : > { %v238_v2 = vrot.slane %v731_v1, 1 }
  0x22   : > { %v735_v3 = vsub.f32 %v731_v1, %v238_v2 }
  0x23   : > { %248 = sbr.rel (%p436_p0) target bundleno = 42 (0x2a), region = 48  ;;  %vm249_vm0 = vcmask (!%p436_p0), 3072   ;;  %v618_v4 = vmov (!%p436_p0), 0.0  }
  0x24   : > { %250 = vst.msk [vmem:[#allocation2] sm:$0xf] (!%p436_p0), %vm249_vm0, %v618_v4  ;;  %251 = vst.msk [vmem:[#allocation3] sm:$0xf] (!%p436_p0), %vm249_vm0, %v618_v4 }
  0x2a PF: > { %vm256_vm1 = vcmask 1041409   ;;  %vm252_vm2 = vcmask 1042432   ;;  %v268_v5 = vmul.f32 %v735_v3, %v735_v3  ;;  %v264_v6 = vmul.f32 %v731_v1, %v731_v1 }
  0x2b   : > { %v257_v7 = vsel %vm256_vm1, %v735_v3, 0.0  ;;  %v253_v8 = vsel %vm252_vm2, %v731_v1, 0.0  ;;  %v276_v14 = vld [vmem:[#allocation2] sm:$0xf]  ;;  %vm278_vm3 = vcmask 3072  }
  0x2c   : > { %258 = vadd.xlane.f32.xlu0 %v257_v7  ;;  %254 = vadd.xlane.f32.xlu1 %v253_v8  ;;  %v269_v9 = vsel %vm256_vm1, %v268_v5, 0.0  ;;  %v265_v10 = vsel %vm252_vm2, %v264_v6, 0.0  ;;  %v280_v20 = vld [vmem:[#allocation3] sm:$0xf] }
  0x30   : > { %270 = vadd.xlane.f32.xlu0 %v269_v9  ;;  %266 = vadd.xlane.f32.xlu1 %v265_v10 }
  0xb9   : > { %v259_v11 = vpop.xlane.xlu0 %258  ;;  %v255_v12 = vpop.xlane.xlu1 %254 }
  0xba   : > { %v261_v13 = vrot.slane %v259_v11, 6 }
  0xbc   : > { %v263_v15 = vsel %vm252_vm2, %v255_v12, %v261_v13 }
  0xbd   : > { %v277_v16 = vadd.f32 %v276_v14, %v263_v15  ;;  %v271_v17 = vpop.xlane.xlu0 %270  ;;  %v267_v18 = vpop.xlane.xlu1 %266 }
  0xbe   : > { %v273_v19 = vrot.slane %v271_v17, 6 }
  0xbf   : > { %279 = vst.msk [vmem:[#allocation2] sm:$0xf] %vm278_vm3, %v277_v16 }
  0xc0   : > { %v275_v21 = vsel %vm252_vm2, %v267_v18, %v273_v19 }
  0xc1   : > { %v281_v22 = vadd.f32 %v280_v20, %v275_v21 }
  0xc3   : > { %282 = vst.msk [vmem:[#allocation3] sm:$0xf] %vm278_vm3, %v281_v22 }
  0xc4 PF: > { %p437_p1 = scmp.ne.s32.totalorder %s604_s24, 1 }
  0xc5   : > { %v619_v25 = vmov (!%p437_p1), 0   ;;  %v295_v31 = vld [vmem:[%s821_s1] sm:$0xf] (!%p437_p1)  ;;  %vm304_vm4 = vcmask (!%p437_p1), 3072   ;;  %v299_v46 = vld [vmem:[#allocation4] sm:$0x1] (!%p437_p1)  ;;  %v337_v55 = vlaneseq (!%p437_p1) }
  0xc6   : > { %286 = sbr.rel (%p437_p1) target bundleno = 402 (0x192), region = 52  ;;  %v287_v23 = vld [vmem:[#allocation2] sm:$0xf] (!%p437_p1)  ;;  %515 = vset.pattern.permute.xlu0 (!%p437_p1), %v619_v25  ;;  %vm319_vm5 = vcmask (!%p437_p1), 1042432   ;;  %v328_v59 = vrot.slane (!%p437_p1), %v735_v3, 6 }
  0xc7   : > { %v288_v26 = vmul.f32 (!%p437_p1), 0.00390625, %v287_v23  ;;  %v297_v33 = vld [vmem:[%s823_s3] sm:$0xf] (!%p437_p1)  ;;  %v338_v58 = vshrl.u32 (!%p437_p1), %v337_v55, 7 }
  0xc8   : > { %v300_v34 = vld [vmem:[%s822_s2] sm:$0xf] (!%p437_p1) }
  0xc9   : > { %v291_v28 = vmul.f32 (!%p437_p1), %v288_v26, %v288_v26  ;;  %v301_v37 = vmul.f32 (!%p437_p1), %v300_v34, %v297_v33  ;;  %v339_v61 = vsub.s32 (!%p437_p1), 0, %v338_v58 }
  0xca   : > { %v289_v24 = vld [vmem:[#allocation3] sm:$0xf] (!%p437_p1) }
  0xcb   : > { %v290_v27 = vmul.f32 (!%p437_p1), 0.00390625, %v289_v24 }
  0xcd   : > { %v292_v29 = vsub.f32 %v290_v27, %v291_v28 }
  0xcf   : > { %v293_v30 = vadd.f32 1e-05, %v292_v29 }
  0xd1   : > { %516 = vrsqrt.f32 %v293_v30 }
  0xdb   : > { %v517_v32 = vpop.eup %516 }
  0xdc   : > { %v296_v35 = vmul.f32 %v517_v32, %v295_v31 }
  0xde   : > { %v298_v36 = vmul.f32 %v297_v33, %v296_v35 }
  0xe0   : > { %315 = vperm.xlu0 %515, %v298_v36   ;;  %v302_v38 = vmul.f32 %v298_v36, %v288_v26 }
  0xe2   : > { %v303_v39 = vsub.f32 %v301_v37, %v302_v38 }
  0xe4   : > { %v305_v40 = vsel %vm304_vm4, %v303_v39, 0.0 }
  0xe5   : > { %v306_v41 = vrot.slane %v305_v40, 4 }
  0xe7   : > { %v307_v42 = vadd.f32 %v306_v41, %v305_v40 }
  0xe9   : > { %v308_v43 = vrot.slane %v307_v42, 2 }
  0xeb   : > { %v309_v44 = vadd.f32 %v308_v43, %v307_v42 }
  0xed   : > { %v310_v45 = vrot.slane %v309_v44, 1 }
  0xef   : > { %v311_v47 = vadd.f32 %v310_v45, %v309_v44 }
  0xf1   : > { %v312_v48 = vadd.f32 %v311_v47, %v299_v46 }
  0xf3   : > { %334 = vperm.xlu0 %515, %v312_v48  }
 0x15f   : > { %v316_v49 = vpop.permute.xlu0 %315 }
 0x160   : > { %v318_v50 = vmul.f32 %v316_v49, %v731_v1  ;;  %v330_v62 = vmul.f32 %v328_v59, %v316_v49 }
 0x162   : > { %v320_v51 = vsel %vm319_vm5, %v318_v50, 0.0 }
 0x163   : > { %v321_v52 = vrot.slane %v320_v51, 4 }
 0x165   : > { %v322_v53 = vadd.f32 %v321_v52, %v320_v51 }
 0x167   : > { %v323_v54 = vrot.slane %v322_v53, 2 }
 0x169   : > { %v324_v56 = vadd.f32 %v323_v54, %v322_v53 }
 0x16b   : > { %v325_v57 = vrot.slane %v324_v56, 1 }
 0x16d   : > { %v326_v60 = vadd.f32 %v325_v57, %v324_v56 }
 0x16f   : > { %v331_v0 = vadd.f32 %v330_v62, %v326_v60 }
 0x172   : > { %v335_v63 = vpop.permute.xlu0 %334 }
 0x173   : > { %v340_v2 = vrot.slane %v335_v63, %v339_v61 }
 0x175   : > { %v341_v4 = vadd.f32 %v340_v2, %v331_v0 }
 0x177   : > { %v438_v5 = vmul.f32 -1.442695, %v341_v4 }
 0x179   : > { %518 = vpow2.f32 %v438_v5 }
 0x183   : > { %v519_v1 = vpop.eup %518 }
 0x184   : > { %v345_v6 = vadd.f32 1.0, %v519_v1 }
 0x186   : > { %520 = vrcp.f32 %v345_v6 }
 0x190   : > { %v521_v7 = vpop.eup %520 }
 0x191   : > { %348 = vst [vmem:[%s739_s19 - $0x3] sm:$0x8] %v521_v7 }
 0x192 PF: > { %s356_s14 = smul.u32 %s600_s23, %s604_s24  ;;  %s363_s15 = sshll.u32 %s739_s19, 4  ;;  %s769_s15 = int_to_ptr.vmem [resolvable:$true] %s363_s15 }
 0x193   : > { %s350_s28 = scalar_lea.sflag [#allocation6], %s229_s13  ;;  %s522_s6 = scalar_lea.vmem %s769_s15, 16 }
 0x194   : > { %s439_s16 = sshll.u32 %s356_s14, 4  ;;  %p523_p2 = scmp.ne.s32.totalorder %s769_s15, %s522_s6 }
 0x195   : > { %s361_s4 = scalar_lea.hbm %s825_s5, %s439_s16  ;;  %s620_s9 = smov [#allocation5]  }
 0x196   : > { %p524_p3 = pnand %p523_p2, %p707_p6  ;;  %s526_s23 = sshll.u32 %s620_s9, 4  ;;  %s527_s23 = int_to_ptr.vmem [resolvable:$false] %s526_s23 }
 0x197   : > { %s528_s24 = scalar_lea.vmem %s527_s23, 32  ;;  %p529_p5 = scmp.lt.s32.totalorder %s769_s15, %s527_s23 }
 0x198   : > { %p525_p4 = pneg %p524_p3  ;;  %p530_p7 = scmp.lt.s32.totalorder %s528_s24, %s522_s6 }
 0x19a   : > { %p531_p9 = por %p530_p7, %p529_p5 }
 0x19c   : > { %p532_p10 = pnand %p531_p9, %p525_p4 }
 0x19e   : > { %535 = shalt.err (!%p532_p10)
}
 0x19f   : > { %s536_s19 = scalar_lea.hbm %s361_s4, 16  ;;  %s540_s11 = scalar_lea.hbm %s825_s5, 32 }
 0x1a0   : > { %p537_p11 = scmp.ne.s32.totalorder %s361_s4, %s536_s19  ;;  %p541_p0 = scmp.lt.u32.totalorder %s361_s4, %s825_s5 }
 0x1a1   : > { %p542_p1 = scmp.lt.u32.totalorder %s540_s11, %s536_s19  ;;  %p544_p3 = scmp.lt.u32.totalorder %s536_s19, %s361_s4 }
 0x1a2   : > { %p538_p12 = pnand %p537_p11, %p707_p6 }
 0x1a3   : > { %p543_p2 = por %p542_p1, %p541_p0 }
 0x1a4   : > { %p539_p13 = pneg %p538_p12 }
 0x1a5   : > { %p545_p5 = por %p544_p3, %p543_p2 }
 0x1a7   : > { %p546_p4 = pnand %p545_p5, %p539_p13 }
 0x1a9   : > { %549 = shalt.err (!%p546_p4)
}
 0x1aa   : > { %442 = dma.vmem_to_hbm [thread:$0]  (%p707_p6), %s769_s15, 16, %s361_s4, %s350_s28  }
 0x1ab PF: > { %p448_p7 = scmp.ge.s32.totalorder %s616_s27, 2  ;;  %s375_s17 = sand.u32 1, %s588_s20  }
 0x1ac   : > { %s376_s18 = scalar_lea.sflag [#allocation6], %s375_s17 }
 0x1ad   : > { %p445_p9 = pnand %p448_p7, %p714_p8 }
 0x1af   : > { %583 = dma.done.wait (!%p445_p9), %s376_s18, 16  }
 0x1b0   : > { %585 = vsyncadd (!%p445_p9), %s376_s18, 4294967280  ;;  %s20_s27 = sadd.s32 1, %s616_s27   ;;  %s828_s20 = smov %s592_s21 }
 0x1b1   : > { %p17_p10 = scmp.ge.s32.totalorder %s20_s27, 6   ;;  %s829_s21 = smov %s596_s22 }
 0x1b2   : > { %s830_s22 = smov %s723_s12  ;;  %s831_s23 = smov %s608_s25 }
 0x1b3   : > { %s832_s24 = smov %s612_s26  ;;  %s833_s25 = smov %s836_s29 }
 0x1b4   : > { %s834_s26 = smov %s840_s30  ;;  %19 = sbr.rel (!%p17_p10) target bundleno = 8 (0x8), region = 87 }
 0x1bb   :  { %380 = vsyncpa [#allocation6], 1 }
 0x1bc   :  { %382 = vsyncpa [#allocation6 + $0x1], 1 }

</bundles_post_ra>
